<compile_context>
chip_gen: v6e
topology: v6e:2x2x1
jax: 0.10.0
libtpu: 0.0.40
codegen_flags: <defaults>
</compile_context>

<pallas_src>
import functools

import numpy as np
import jax
import jax.numpy as jnp
from jax.experimental import pallas as pl
from jax.experimental.pallas import tpu as pltpu


def _round_up(x, m):
    return ((x + m - 1) // m) * m


# ----------------------------- librosa-style mel filterbank (slaney) -----------------------------
def _hz_to_mel(f):
    f = np.asarray(f, dtype=np.float64)
    f_sp = 200.0 / 3
    mels = f / f_sp
    min_log_hz = 1000.0
    min_log_mel = min_log_hz / f_sp
    logstep = np.log(6.4) / 27.0
    return np.where(f >= min_log_hz,
                    min_log_mel + np.log(np.maximum(f, 1e-12) / min_log_hz) / logstep,
                    mels)


def _mel_to_hz(m):
    m = np.asarray(m, dtype=np.float64)
    f_sp = 200.0 / 3
    freqs = f_sp * m
    min_log_hz = 1000.0
    min_log_mel = min_log_hz / f_sp
    logstep = np.log(6.4) / 27.0
    return np.where(m >= min_log_mel,
                    min_log_hz * np.exp(logstep * (m - min_log_mel)),
                    freqs)


def mel_filterbank(sr, n_fft, n_mels, fmin, fmax):
    """Equivalent of librosa.filters.mel(sr, n_fft, n_mels=..., fmin=..., fmax=...) (slaney norm)."""
    n_freq = n_fft // 2 + 1
    fftfreqs = np.linspace(0.0, sr / 2.0, n_freq)
    mel_pts = np.linspace(_hz_to_mel(fmin), _hz_to_mel(fmax), n_mels + 2)
    mel_f = _mel_to_hz(mel_pts)
    fdiff = np.diff(mel_f)
    ramps = mel_f[:, None] - fftfreqs[None, :]
    lower = -ramps[:-2] / fdiff[:-1, None]
    upper = ramps[2:] / fdiff[1:, None]
    weights = np.maximum(0.0, np.minimum(lower, upper))
    enorm = 2.0 / (mel_f[2:n_mels + 2] - mel_f[:n_mels])
    weights = weights * enorm[:, None]
    return weights.astype(np.float32)  # (n_mels, n_freq)


# ----------------------------- Pallas kernel -----------------------------
def _aud2mel_kernel(frames_ref, dft_ref, melT_ref, out_ref, *, n_freq_p):
    # frames_ref: (tile_m, n_fft)         bf16   one M-tile of flattened frames
    # dft_ref:    (n_fft, 2*n_freq_p)     bf16   windowed [cos | sin] real-DFT matrix
    # melT_ref:   (n_freq_p, n_mels_p)    f32    zero-padded mel basis, transposed
    # out_ref:    (tile_m, n_mels_p)      f32    lane-dense output block
    ri = jnp.dot(frames_ref[...], dft_ref[...],
                 preferred_element_type=jnp.float32)          # (tile_m, 2*n_freq_p)
    re = ri[:, :n_freq_p]
    im = ri[:, n_freq_p:]
    power = re * re + im * im                                 # (tile_m, n_freq_p)
    mel = jnp.dot(power, melT_ref[...],
                  preferred_element_type=jnp.float32)         # (tile_m, n_mels_p)
    out_ref[...] = jnp.log10(jnp.maximum(mel, jnp.float32(1e-10)))


def aud2mel_pallas(auds, *, n_mels, sample_rate, n_fft, win_len, hop_len, tile_m=128):
    """auds: (B, T) float32 -> (B, n_frames, n_mels) float32."""
    auds = jnp.asarray(auds, jnp.float32)
    B, T = auds.shape
    n_freq = n_fft // 2 + 1
    n_freq_p = _round_up(n_freq, 128)      # lane-align frequency axis
    n_mels_p = _round_up(n_mels, 128)      # lane-dense output axis

    # ---- constants (numpy glue) ----
    # periodic Hann window (torch.hann_window default), center-padded to n_fft
    n = np.arange(win_len, dtype=np.float64)
    window = 0.5 - 0.5 * np.cos(2.0 * np.pi * n / win_len)
    wpad = np.zeros(n_fft, dtype=np.float64)
    left = (n_fft - win_len) // 2
    wpad[left:left + win_len] = window

    # fused, zero-padded [cos | sin] windowed real-DFT matrix (sign of sin irrelevant after squaring)
    nn = np.arange(n_fft, dtype=np.float64)[:, None]
    kk = np.arange(n_freq, dtype=np.float64)[None, :]
    ang = 2.0 * np.pi * nn * kk / n_fft
    dft = np.zeros((n_fft, 2 * n_freq_p), dtype=np.float32)
    dft[:, :n_freq] = wpad[:, None] * np.cos(ang)
    dft[:, n_freq_p:n_freq_p + n_freq] = wpad[:, None] * np.sin(ang)
    dft = jnp.asarray(dft, jnp.bfloat16)                       # bf16 -> native MXU throughput

    mel_basis = mel_filterbank(sample_rate, n_fft, n_mels, 0.0, 8000.0)  # (n_mels, n_freq)
    melT_np = np.zeros((n_freq_p, n_mels_p), dtype=np.float32)
    melT_np[:n_freq, :n_mels] = mel_basis.T                    # padded rows/cols are zero
    melT = jnp.asarray(melT_np)

    # ---- framing glue: reflect pad (torch.stft center=True) + strided gather ----
    pad = n_fft // 2
    padded = jnp.pad(auds, ((0, 0), (pad, pad)), mode="reflect")
    n_frames = 1 + T // hop_len
    idx = np.arange(n_frames)[:, None] * hop_len + np.arange(n_fft)[None, :]
    frames = padded[:, idx].reshape(B * n_frames, n_fft)       # flatten (B, n_frames) -> M rows

    M = B * n_frames
    M_p = _round_up(M, tile_m)
    if M_p != M:
        frames = jnp.pad(frames, ((0, M_p - M), (0, 0)))       # zero rows -> sliced off below
    frames = frames.astype(jnp.bfloat16)

    kernel = functools.partial(_aud2mel_kernel, n_freq_p=n_freq_p)

    out = pl.pallas_call(
        kernel,
        out_shape=jax.ShapeDtypeStruct((M_p, n_mels_p), jnp.float32),
        grid_spec=pltpu.PrefetchScalarGridSpec(
            num_scalar_prefetch=0,
            grid=(M_p // tile_m,),
            in_specs=[
                pl.BlockSpec((tile_m, n_fft), lambda m: (m, 0)),
                # Invariant operands (could also be single-buffered via pipeline_mode
                # for very large n_fft configs to save VMEM headroom on v7x/v5e).
                pl.BlockSpec((n_fft, 2 * n_freq_p), lambda m: (0, 0)),
                pl.BlockSpec((n_freq_p, n_mels_p), lambda m: (0, 0)),
            ],
            out_specs=pl.BlockSpec((tile_m, n_mels_p), lambda m: (m, 0)),
        ),
        compiler_params=pltpu.CompilerParams(
            dimension_semantics=("parallel",),
            vmem_limit_bytes=48 * 1024 * 1024,   # generation-independent working set (< v7x 64 MiB)
        ),
    )(frames, dft, melT)

    # Strip row padding and the padded mel columns (they hold log10(1e-10) = -10).
    return out[:M, :n_mels].reshape(B, n_frames, n_mels)


# ----------------------------- pure-JAX reference for sanity check -----------------------------
def aud2mel_ref(auds, *, n_mels, sample_rate, n_fft, win_len, hop_len):
    auds = jnp.asarray(auds, jnp.float32)
    B, T = auds.shape
    n = np.arange(win_len)
    window = 0.5 - 0.5 * np.cos(2.0 * np.pi * n / win_len)
    wpad = np.zeros(n_fft)
    left = (n_fft - win_len) // 2
    wpad[left:left + win_len] = window
    pad = n_fft // 2
    padded = jnp.pad(auds, ((0, 0), (pad, pad)), mode="reflect")
    n_frames = 1 + T // hop_len
    idx = np.arange(n_frames)[:, None] * hop_len + np.arange(n_fft)[None, :]
    frames = padded[:, idx] * jnp.asarray(wpad, jnp.float32)
    spec = jnp.fft.rfft(frames, n=n_fft, axis=-1)              # (B, n_frames, n_freq)
    power = jnp.abs(spec) ** 2
    mel_basis = jnp.asarray(mel_filterbank(sample_rate, n_fft, n_mels, 0.0, 8000.0))
    mel = jnp.einsum("bfk,mk->bfm", power, mel_basis)          # (B, n_frames, n_mels)
    return jnp.log10(jnp.maximum(mel, 1e-10))


if __name__ == "__main__":
    # small, consistent config
    n_mels, sample_rate, n_fft, win_len, hop_len = 8, 16000, 64, 64, 16
    B, T = 2, 256

    key = jax.random.PRNGKey(0)
    auds = jax.random.normal(key, (B, T), dtype=jnp.float32)

    out = aud2mel_pallas(auds, n_mels=n_mels, sample_rate=sample_rate,
                         n_fft=n_fft, win_len=win_len, hop_len=hop_len)
    out = jax.block_until_ready(out)

    ref = aud2mel_ref(auds, n_mels=n_mels, sample_rate=sample_rate,
                      n_fft=n_fft, win_len=win_len, hop_len=hop_len)
    np.testing.assert_allclose(np.asarray(out), np.asarray(ref), rtol=5e-2, atol=5e-2)

    print("KERNEL_OK")
</pallas_src>

<mosaic_0001>
module attributes {stable_mosaic.version = 11 : i64} {
  func.func @_aud2mel_kernel(%arg0: i32, %arg1: memref<128x64xbf16, #tpu.memory_space<vmem>>, %arg2: memref<64x256xbf16, #tpu.memory_space<vmem>>, %arg3: memref<128x128xf32, #tpu.memory_space<vmem>>, %arg4: memref<128x128xf32, #tpu.memory_space<vmem>>) attributes {dimension_semantics = [#tpu.dimension_semantics<parallel>], iteration_bounds = array<i64: 1>, scalar_prefetch = 0 : i64, scratch_operands = 0 : i64, tpu.core_type = #tpu.core_type<tc>, window_params = [{transform_indices = @transform_0, window_bounds = array<i64: 128, 64>}, {pipeline_mode = #tpu.pipeline_mode<synchronous>, transform_indices = @transform_1, window_bounds = array<i64: 64, 256>}, {pipeline_mode = #tpu.pipeline_mode<synchronous>, transform_indices = @transform_2, window_bounds = array<i64: 128, 128>}, {transform_indices = @transform_3, window_bounds = array<i64: 128, 128>}]} {
    %c0 = arith.constant 0 : index
    %c0_0 = arith.constant 0 : index
    %0 = vector.load %arg1[%c0, %c0_0] : memref<128x64xbf16, #tpu.memory_space<vmem>>, vector<128x64xbf16>
    %c0_1 = arith.constant 0 : index
    %c0_2 = arith.constant 0 : index
    %1 = vector.load %arg2[%c0_1, %c0_2] : memref<64x256xbf16, #tpu.memory_space<vmem>>, vector<64x256xbf16>
    %cst = arith.constant dense<0.000000e+00> : vector<128x256xf32>
    %2 = tpu.matmul %0, %1, %cst {dimension_numbers = #tpu.dot_dimension_numbers<[1], [0], [0], [1], [0, 0, 1, 1], [], []>} : vector<128x64xbf16>, vector<64x256xbf16>, vector<128x256xf32> -> vector<128x256xf32>
    %3 = vector.extract_strided_slice %2 {offsets = [0, 0], sizes = [128, 128], strides = [1, 1]} : vector<128x256xf32> to vector<128x128xf32>
    %4 = vector.extract_strided_slice %2 {offsets = [0, 128], sizes = [128, 128], strides = [1, 1]} : vector<128x256xf32> to vector<128x128xf32>
    %5 = arith.mulf %3, %3 : vector<128x128xf32>
    %6 = arith.mulf %4, %4 : vector<128x128xf32>
    %7 = arith.addf %5, %6 : vector<128x128xf32>
    %c0_3 = arith.constant 0 : index
    %c0_4 = arith.constant 0 : index
    %8 = vector.load %arg3[%c0_3, %c0_4] : memref<128x128xf32, #tpu.memory_space<vmem>>, vector<128x128xf32>
    %cst_5 = arith.constant dense<0.000000e+00> : vector<128x128xf32>
    %9 = tpu.matmul %7, %8, %cst_5 {dimension_numbers = #tpu.dot_dimension_numbers<[1], [0], [0], [1], [0, 0, 1, 1], [], []>} : vector<128x128xf32>, vector<128x128xf32>, vector<128x128xf32> -> vector<128x128xf32>
    %cst_6 = arith.constant 1.000000e-10 : f32
    %10 = vector.broadcast %cst_6 : f32 to vector<128x128xf32>
    %11 = arith.maximumf %9, %10 : vector<128x128xf32>
    %12 = math.log %11 : vector<128x128xf32>
    %cst_7 = arith.constant 0.434294492 : f32
    %13 = vector.broadcast %cst_7 : f32 to vector<128x128xf32>
    %14 = arith.mulf %12, %13 : vector<128x128xf32>
    %c0_8 = arith.constant 0 : index
    %c0_9 = arith.constant 0 : index
    %15 = vector.load %arg4[%c0_8, %c0_9] : memref<128x128xf32, #tpu.memory_space<vmem>>, vector<128x128xf32>
    tpu.vector_store %arg4[%c0_8, %c0_9], %14 {strides = array<i32>} : memref<128x128xf32, #tpu.memory_space<vmem>>, vector<128x128xf32>,
    return
  }
  func.func @transform_0(%arg0: i32) -> (i32, i32) {
    %c0_i32 = arith.constant 0 : i32
    %c0_i32_0 = arith.constant 0 : i32
    return %arg0, %c0_i32 : i32, i32
  }
  func.func @transform_1(%arg0: i32) -> (i32, i32) {
    %c0_i32 = arith.constant 0 : i32
    %c0_i32_0 = arith.constant 0 : i32
    %c0_i32_1 = arith.constant 0 : i32
    return %c0_i32, %c0_i32_0 : i32, i32
  }
  func.func @transform_2(%arg0: i32) -> (i32, i32) {
    %c0_i32 = arith.constant 0 : i32
    %c0_i32_0 = arith.constant 0 : i32
    %c0_i32_1 = arith.constant 0 : i32
    return %c0_i32, %c0_i32_0 : i32, i32
  }
  func.func @transform_3(%arg0: i32) -> (i32, i32) {
    %c0_i32 = arith.constant 0 : i32
    %c0_i32_0 = arith.constant 0 : i32
    return %arg0, %c0_i32 : i32, i32
  }
}

</mosaic_0001>

<bundles_post_ra>
// kernel: tpu_custom_call.1
= control target key start
LH: loop header
LB: loop body
LE: loop exit
PB: predicated region body
PF: predicated region fallthrough
CT: control target
= control target key end

     0   :  { %8 = vsyncpa [#allocation3], 0  ;;  %s892_s0 = inlined_call_operand.vmem [shape: bf16[128,64], index: 0, kind: input, shape index: {}]   ;;  %s893_s1 = inlined_call_operand.vmem [shape: bf16[64,256], index: 1, kind: input, shape index: {}]   ;;  %s894_s2 = inlined_call_operand.hbm [shape: f32[128,128], index: 2, kind: input, shape index: {}]   ;;  %s895_s3 = inlined_call_operand.hbm [shape: f32[128,128], index: 3, kind: output, shape index: {}]  }
   0x1   :  { %9 = vsyncpa [#allocation4], 0  ;;  %s791_s12 = smov [#allocation2]  }
   0x2   :  { %s19_s13 = sshll.u32 %s791_s12, 4  ;;  %s20_s13 = int_to_ptr.vmem [resolvable:$true] %s19_s13 }
   0x3   :  { %s755_s14 = scalar_lea.vmem %s20_s13, 2048  ;;  %p760_p1 = scmp.lt.s32.totalorder %s20_s13, %s20_s13 }
   0x4   :  { %p756_p0 = scmp.ne.s32.totalorder %s20_s13, %s755_s14  ;;  %p761_p2 = scmp.lt.s32.totalorder %s755_s14, %s755_s14 }
   0x6   :  { %p762_p3 = por %p761_p2, %p760_p1 }
   0x8   :  { %p763_p4 = pnand %p762_p3, %p756_p0 }
   0xa   :  { %766 = shalt.err (!%p763_p4)
}
   0xb   :  { %s792_s15 = smov 128   ;;  %s793_s16 = smov 8  }
   0xc   :  { %25 = dma.hbm_to_vmem [thread:$0]  %s894_s2, 2048, %s20_s13, [#allocation3], %s792_s15, %s792_s15, %s793_s16  }
   0xd   :  { %787 = dma.done.wait [#allocation3], 2048  }
   0xe   :  { %788 = vsyncadd [#allocation3], 4294965248  ;;  %v794_v0 = vmov 0   ;;  %v695_v1 = vld [vmem:[%s893_s1 + $0x34] ss:$8 sps:$4 sm:$0xff]   ;;  %v707_v11 = vld [vmem:[%s892_s0] sm:$0xff]  }
   0xf   :  { %191 = vmatprep.mubr.bf16.mxu0 %v794_v0  ;;  %v697_v2 = vld [vmem:[%s893_s1 + $0x30] ss:$8 sps:$4 sm:$0xff]   ;;  %167 = vmatprep.subr.bf16.mxu0 %v695_v1  ;;  %v698_v3 = vld [vmem:[%s893_s1 + $0x24] ss:$8 sps:$4 sm:$0xff]   ;;  %v700_v4 = vld [vmem:[%s893_s1 + $0x20] ss:$8 sps:$4 sm:$0xff]  }
  0x10   :  { %168 = vmatpush1.bf16.msra.mxu0 %v697_v2  ;;  %v701_v5 = vld [vmem:[%s893_s1 + $0x14] ss:$8 sps:$4 sm:$0xff]   ;;  %v703_v6 = vld [vmem:[%s893_s1 + $0x10] ss:$8 sps:$4 sm:$0xff]   ;;  %v704_v7 = vld [vmem:[%s893_s1 + $0x4] ss:$8 sps:$4 sm:$0xff]  }
  0x11   :  { %169 = vmatprep.subr.bf16.mxu0 %v698_v3  ;;  %v706_v8 = vld [vmem:[%s893_s1] ss:$8 sps:$4 sm:$0xff]   ;;  %v335_v9 = vld [vmem:[#allocation2 + $0x78] sm:$0xff]  ;;  %v334_v10 = vld [vmem:[#allocation2 + $0x70] sm:$0xff]  ;;  %vm134_vm0 = vcmask 523264  }
  0x12   :  { %634 = vmatprep.subr.mxu1 %v335_v9  ;;  %v333_v12 = vld [vmem:[#allocation2 + $0x68] sm:$0xff]  ;;  %v332_v13 = vld [vmem:[#allocation2 + $0x60] sm:$0xff]  ;;  %v331_v14 = vld [vmem:[#allocation2 + $0x58] sm:$0xff] }
  0x13   :  { %635 = vmatpush3.msra.mxu1 %v335_v9  ;;  %v330_v15 = vld [vmem:[#allocation2 + $0x50] sm:$0xff]  ;;  %v708_v16 = vld [vmem:[%s892_s0 + $0x8] sm:$0xff]   ;;  %v328_v18 = vld [vmem:[#allocation2 + $0x40] sm:$0xff] }
  0x14   :  { %170 = vmatpush1.bf16.msra.mxu0 %v700_v4  ;;  %636 = vmatprep.subr.mxu1 %v334_v10  ;;  %v329_v17 = vld [vmem:[#allocation2 + $0x48] sm:$0xff]  ;;  %v327_v19 = vld [vmem:[#allocation2 + $0x38] sm:$0xff]  ;;  %v326_v20 = vld [vmem:[#allocation2 + $0x30] sm:$0xff] }
  0x15   :  { %171 = vmatprep.subr.bf16.mxu0 %v701_v5  ;;  %637 = vmatpush3.msra.mxu1 %v334_v10  ;;  %v709_v21 = vld [vmem:[%s892_s0 + $0x10] sm:$0xff]   ;;  %v325_v22 = vld [vmem:[#allocation2 + $0x28] sm:$0xff]  ;;  %v710_v23 = vld [vmem:[%s892_s0 + $0x18] sm:$0xff]  }
  0x16   :  { %638 = vmatprep.subr.mxu1 %v333_v12  ;;  %v711_v24 = vld [vmem:[%s892_s0 + $0x20] sm:$0xff]   ;;  %v712_v25 = vld [vmem:[%s892_s0 + $0x28] sm:$0xff]   ;;  %v713_v26 = vld [vmem:[%s892_s0 + $0x30] sm:$0xff]  }
  0x17   :  { %639 = vmatpush3.msra.mxu1 %v333_v12  ;;  %v714_v27 = vld [vmem:[%s892_s0 + $0x38] sm:$0xff]   ;;  %v324_v28 = vld [vmem:[#allocation2 + $0x20] sm:$0xff]  ;;  %v322_v30 = vld [vmem:[#allocation2 + $0x10] sm:$0xff]  ;;  %s795_s0 = smov [#allocation5]  }
  0x18   :  { %172 = vmatpush1.bf16.msra.mxu0 %v703_v6  ;;  %640 = vmatprep.subr.mxu1 %v332_v13  ;;  %v323_v29 = vld [vmem:[#allocation2 + $0x18] sm:$0xff]  ;;  %v321_v31 = vld [vmem:[#allocation2 + $0x8] sm:$0xff]  ;;  %v320_v32 = vld [vmem:[#allocation2] sm:$0xff]  ;;  %s566_s24 = sshll.u32 %s795_s0, 4  ;;  %s567_s24 = int_to_ptr.vmem [resolvable:$true] %s566_s24 }
  0x19   :  { %173 = vmatprep.subr.bf16.mxu0 %v704_v7  ;;  %641 = vmatpush3.msra.mxu1 %v332_v13  ;;  %s767_s2 = scalar_lea.vmem %s567_s24, 2048  ;;  %p772_p6 = scmp.lt.s32.totalorder %s567_s24, %s567_s24 }
  0x1a   :  { %642 = vmatprep.subr.mxu1 %v331_v14  ;;  %p768_p5 = scmp.ne.s32.totalorder %s567_s24, %s767_s2  ;;  %p773_p7 = scmp.lt.s32.totalorder %s767_s2, %s767_s2 }
  0x1b   :  { %643 = vmatpush3.msra.mxu1 %v331_v14 }
  0x1c   :  { %174 = vmatpush1.bf16.msra.mxu0 %v706_v8  ;;  %644 = vmatprep.subr.mxu1 %v330_v15  ;;  %p774_p8 = por %p773_p7, %p772_p6 }
  0x1d   :  { %645 = vmatpush3.msra.mxu1 %v330_v15 }
  0x1e   :  { %646 = vmatprep.subr.mxu1 %v329_v17  ;;  %p775_p9 = pnand %p774_p8, %p768_p5 }
  0x1f   :  { %594 = vmatmul.mubr.msk.bf16.vlgmr.msra.gmra.mxu0 %vm134_vm0, %v707_v11  ;;  %647 = vmatpush3.msra.mxu1 %v329_v17 }
  0x20   :  { %201 = vmatprep.mubr.bf16.mxu0 %v794_v0  ;;  %648 = vmatprep.subr.mxu1 %v328_v18 }
  0x21   :  { %649 = vmatpush3.msra.mxu1 %v328_v18 }
  0x22   :  { %650 = vmatprep.subr.mxu1 %v327_v19 }
  0x23   :  { %651 = vmatpush3.msra.mxu1 %v327_v19 }
  0x24   :  { %652 = vmatprep.subr.mxu1 %v326_v20 }
  0x25   :  { %653 = vmatpush3.msra.mxu1 %v326_v20 }
  0x26   :  { %654 = vmatprep.subr.mxu1 %v325_v22 }
  0x27   :  { %595 = vmatmul.mubr.msk.bf16.gmra.mxu0 %vm134_vm0, %v708_v16  ;;  %655 = vmatpush3.msra.mxu1 %v325_v22 }
  0x28   :  { %211 = vmatprep.mubr.bf16.mxu0 %v794_v0  ;;  %656 = vmatprep.subr.mxu1 %v324_v28 }
  0x29   :  { %657 = vmatpush3.msra.mxu1 %v324_v28 }
  0x2a   :  { %658 = vmatprep.subr.mxu1 %v323_v29 }
  0x2b   :  { %659 = vmatpush3.msra.mxu1 %v323_v29 }
  0x2c   :  { %660 = vmatprep.subr.mxu1 %v322_v30 }
  0x2d   :  { %661 = vmatpush3.msra.mxu1 %v322_v30 }
  0x2e   :  { %662 = vmatprep.subr.mxu1 %v321_v31 }
  0x2f   :  { %596 = vmatmul.mubr.msk.bf16.gmra.mxu0 %vm134_vm0, %v709_v21  ;;  %663 = vmatpush3.msra.mxu1 %v321_v31 }
  0x30   :  { %221 = vmatprep.mubr.bf16.mxu0 %v794_v0  ;;  %664 = vmatprep.subr.mxu1 %v320_v32 }
  0x31   :  { %665 = vmatpush3.msra.mxu1 %v320_v32 }
  0x37   :  { %597 = vmatmul.mubr.msk.bf16.gmra.mxu0 %vm134_vm0, %v710_v23 }
  0x38   :  { %231 = vmatprep.mubr.bf16.mxu0 %v794_v0 }
  0x3f   :  { %598 = vmatmul.mubr.msk.bf16.gmra.mxu0 %vm134_vm0, %v711_v24 }
  0x40   :  { %241 = vmatprep.mubr.bf16.mxu0 %v794_v0 }
  0x47   :  { %599 = vmatmul.mubr.msk.bf16.gmra.mxu0 %vm134_vm0, %v712_v25 }
  0x48   :  { %251 = vmatprep.mubr.bf16.mxu0 %v794_v0 }
  0x4f   :  { %600 = vmatmul.mubr.msk.bf16.gmra.mxu0 %vm134_vm0, %v713_v26 }
  0x50   :  { %261 = vmatprep.mubr.bf16.mxu0 %v794_v0 }
  0x57   :  { %601 = vmatmul.mubr.msk.bf16.gmra.mxu0 %vm134_vm0, %v714_v27 }
  0xdf   :  { %v193_v33 = vpop.f32.mrf.mxu0 }
  0xe0   :  { %v272_v35 = vmul.f32 %v193_v33, %v193_v33 }
  0xe1   :  { %v195_v34 = vpop.f32.mrf.mxu0 }
  0xe2   :  { %v288_v36 = vmul.f32 %v195_v34, %v195_v34 }
  0xe3   :  { %v197_v37 = vpop.f32.mrf.mxu0 }
  0xe4   :  { %v304_v38 = vadd.f32 %v288_v36, %v272_v35  ;;  %v273_v40 = vmul.f32 %v197_v37, %v197_v37 }
  0xe5   :  { %v199_v39 = vpop.f32.mrf.mxu0 }
  0xe6   :  { %v289_v41 = vmul.f32 %v199_v39, %v199_v39  ;;  %666 = vmatprep.mubr.f32.mxu1 %v304_v38 }
  0xe7   :  { %v203_v42 = vpop.f32.mrf.mxu0 }
  0xe8   :  { %v305_v43 = vadd.f32 %v289_v41, %v273_v40  ;;  %v274_v45 = vmul.f32 %v203_v42, %v203_v42 }
  0xe9   :  { %v205_v44 = vpop.f32.mrf.mxu0 }
  0xea   :  { %v290_v46 = vmul.f32 %v205_v44, %v205_v44  ;;  %667 = vmatmul.mubr.f32.vlgmr.msra.gmra.mxu1 %v305_v43 }
  0xeb   :  { %v207_v47 = vpop.f32.mrf.mxu0 }
  0xec   :  { %v306_v48 = vadd.f32 %v290_v46, %v274_v45  ;;  %v275_v50 = vmul.f32 %v207_v47, %v207_v47 }
  0xed   :  { %v209_v49 = vpop.f32.mrf.mxu0 }
  0xee   :  { %v291_v51 = vmul.f32 %v209_v49, %v209_v49  ;;  %669 = vmatprep.mubr.f32.mxu1 %v306_v48 }
  0xef   :  { %v213_v52 = vpop.f32.mrf.mxu0 }
  0xf0   :  { %v307_v53 = vadd.f32 %v291_v51, %v275_v50  ;;  %v276_v55 = vmul.f32 %v213_v52, %v213_v52 }
  0xf1   :  { %v215_v54 = vpop.f32.mrf.mxu0 }
  0xf2   :  { %v292_v56 = vmul.f32 %v215_v54, %v215_v54  ;;  %670 = vmatmul.mubr.f32.gmra.mxu1 %v307_v53 }
  0xf3   :  { %v217_v57 = vpop.f32.mrf.mxu0 }
  0xf4   :  { %v308_v58 = vadd.f32 %v292_v56, %v276_v55  ;;  %v277_v60 = vmul.f32 %v217_v57, %v217_v57 }
  0xf5   :  { %v219_v59 = vpop.f32.mrf.mxu0 }
  0xf6   :  { %v293_v61 = vmul.f32 %v219_v59, %v219_v59  ;;  %672 = vmatprep.mubr.f32.mxu1 %v308_v58 }
  0xf7   :  { %v223_v62 = vpop.f32.mrf.mxu0 }
  0xf8   :  { %v309_v63 = vadd.f32 %v293_v61, %v277_v60  ;;  %v278_v1 = vmul.f32 %v223_v62, %v223_v62 }
  0xf9   :  { %v225_v0 = vpop.f32.mrf.mxu0 }
  0xfa   :  { %v294_v2 = vmul.f32 %v225_v0, %v225_v0  ;;  %673 = vmatmul.mubr.f32.gmra.mxu1 %v309_v63 }
  0xfb   :  { %v227_v3 = vpop.f32.mrf.mxu0 }
  0xfc   :  { %v310_v4 = vadd.f32 %v294_v2, %v278_v1  ;;  %v279_v6 = vmul.f32 %v227_v3, %v227_v3 }
  0xfd   :  { %v229_v5 = vpop.f32.mrf.mxu0 }
  0xfe   :  { %v295_v7 = vmul.f32 %v229_v5, %v229_v5  ;;  %675 = vmatprep.mubr.f32.mxu1 %v310_v4 }
  0xff   :  { %v233_v8 = vpop.f32.mrf.mxu0 }
 0x100   :  { %v311_v9 = vadd.f32 %v295_v7, %v279_v6  ;;  %v280_v11 = vmul.f32 %v233_v8, %v233_v8 }
 0x101   :  { %v235_v10 = vpop.f32.mrf.mxu0 }
 0x102   :  { %v296_v12 = vmul.f32 %v235_v10, %v235_v10  ;;  %676 = vmatmul.mubr.f32.gmra.mxu1 %v311_v9 }
 0x103   :  { %v237_v13 = vpop.f32.mrf.mxu0 }
 0x104   :  { %v312_v14 = vadd.f32 %v296_v12, %v280_v11  ;;  %v281_v16 = vmul.f32 %v237_v13, %v237_v13 }
 0x105   :  { %v239_v15 = vpop.f32.mrf.mxu0 }
 0x106   :  { %v297_v17 = vmul.f32 %v239_v15, %v239_v15  ;;  %678 = vmatprep.mubr.f32.mxu1 %v312_v14 }
 0x107   :  { %v243_v18 = vpop.f32.mrf.mxu0 }
 0x108   :  { %v313_v19 = vadd.f32 %v297_v17, %v281_v16  ;;  %v282_v21 = vmul.f32 %v243_v18, %v243_v18 }
 0x109   :  { %v245_v20 = vpop.f32.mrf.mxu0 }
 0x10a   :  { %v298_v22 = vmul.f32 %v245_v20, %v245_v20  ;;  %679 = vmatmul.mubr.f32.gmra.mxu1 %v313_v19 }
 0x10b   :  { %v247_v23 = vpop.f32.mrf.mxu0 }
 0x10c   :  { %v314_v24 = vadd.f32 %v298_v22, %v282_v21  ;;  %v283_v26 = vmul.f32 %v247_v23, %v247_v23 }
 0x10d   :  { %v249_v25 = vpop.f32.mrf.mxu0 }
 0x10e   :  { %v299_v27 = vmul.f32 %v249_v25, %v249_v25  ;;  %681 = vmatprep.mubr.f32.mxu1 %v314_v24 }
 0x10f   :  { %v253_v28 = vpop.f32.mrf.mxu0 }
 0x110   :  { %v315_v29 = vadd.f32 %v299_v27, %v283_v26  ;;  %v284_v31 = vmul.f32 %v253_v28, %v253_v28 }
 0x111   :  { %v255_v30 = vpop.f32.mrf.mxu0 }
 0x112   :  { %v300_v32 = vmul.f32 %v255_v30, %v255_v30  ;;  %682 = vmatmul.mubr.f32.gmra.mxu1 %v315_v29 }
 0x113   :  { %v257_v33 = vpop.f32.mrf.mxu0 }
 0x114   :  { %v316_v34 = vadd.f32 %v300_v32, %v284_v31  ;;  %v285_v36 = vmul.f32 %v257_v33, %v257_v33 }
 0x115   :  { %v259_v35 = vpop.f32.mrf.mxu0 }
 0x116   :  { %v301_v37 = vmul.f32 %v259_v35, %v259_v35  ;;  %684 = vmatprep.mubr.f32.mxu1 %v316_v34 }
 0x117   :  { %v263_v38 = vpop.f32.mrf.mxu0 }
 0x118   :  { %v317_v39 = vadd.f32 %v301_v37, %v285_v36  ;;  %v286_v41 = vmul.f32 %v263_v38, %v263_v38 }
 0x119   :  { %v265_v40 = vpop.f32.mrf.mxu0 }
 0x11a   :  { %v302_v42 = vmul.f32 %v265_v40, %v265_v40  ;;  %685 = vmatmul.mubr.f32.gmra.mxu1 %v317_v39 }
 0x11b   :  { %v267_v43 = vpop.f32.mrf.mxu0 }
 0x11c   :  { %v318_v44 = vadd.f32 %v302_v42, %v286_v41  ;;  %v287_v46 = vmul.f32 %v267_v43, %v267_v43 }
 0x11d   :  { %v269_v45 = vpop.f32.mrf.mxu0 }
 0x11e   :  { %v303_v47 = vmul.f32 %v269_v45, %v269_v45  ;;  %687 = vmatprep.mubr.f32.mxu1 %v318_v44 }
 0x120   :  { %v319_v48 = vadd.f32 %v303_v47, %v287_v46 }
 0x122   :  { %688 = vmatmul.mubr.f32.gmra.mxu1 %v319_v48 }
 0x1aa   :  { %v668_v49 = vpop.f32.mrf.mxu1 }
 0x1ab   :  { %v482_v50 = vmax.f32 %v668_v49, 1e-10 }
 0x1ac   :  { %v402_v51 = vpop.f32.mrf.mxu1 }
 0x1ad   :  { %715 = vlog2.f32 %v482_v50  ;;  %v481_v52 = vmax.f32 %v402_v51, 1e-10 }
 0x1af   :  { %717 = vlog2.f32 %v481_v52 }
 0x1b2   :  { %v671_v53 = vpop.f32.mrf.mxu1 }
 0x1b3   :  { %v484_v54 = vmax.f32 %v671_v53, 1e-10 }
 0x1b4   :  { %v412_v55 = vpop.f32.mrf.mxu1 }
 0x1b5   :  { %719 = vlog2.f32 %v484_v54  ;;  %v483_v56 = vmax.f32 %v412_v55, 1e-10 }
 0x1b7   :  { %721 = vlog2.f32 %v483_v56 }
 0x1ba   :  { %v716_v57 = vpop.eup %715  ;;  %v674_v58 = vpop.f32.mrf.mxu1 }
 0x1bb   :  { %v500_v59 = vmul.f32 0.6931472, %v716_v57  ;;  %v486_v60 = vmax.f32 %v674_v58, 1e-10 }
 0x1bc   :  { %v718_v61 = vpop.eup %717  ;;  %v422_v62 = vpop.f32.mrf.mxu1 }
 0x1bd   :  { %v530_v63 = vmul.f32 0.4342945, %v500_v59  ;;  %v498_v0 = vmul.f32 0.6931472, %v718_v61  ;;  %723 = vlog2.f32 %v486_v60  ;;  %v485_v1 = vmax.f32 %v422_v62, 1e-10 }
 0x1bf   :  { %546 = vst [vmem:[#allocation5 + $0x8] sm:$0xff] %v530_v63  ;;  %v529_v2 = vmul.f32 0.4342945, %v498_v0  ;;  %725 = vlog2.f32 %v485_v1 }
 0x1c1   :  { %545 = vst [vmem:[#allocation5] sm:$0xff] %v529_v2 }
 0x1c2   :  { %v720_v3 = vpop.eup %719  ;;  %v677_v4 = vpop.f32.mrf.mxu1 }
 0x1c3   :  { %v504_v5 = vmul.f32 0.6931472, %v720_v3  ;;  %v488_v6 = vmax.f32 %v677_v4, 1e-10 }
 0x1c4   :  { %v722_v7 = vpop.eup %721  ;;  %v432_v8 = vpop.f32.mrf.mxu1 }
 0x1c5   :  { %v532_v9 = vmul.f32 0.4342945, %v504_v5  ;;  %v502_v10 = vmul.f32 0.6931472, %v722_v7  ;;  %727 = vlog2.f32 %v488_v6  ;;  %v487_v11 = vmax.f32 %v432_v8, 1e-10 }
 0x1c7   :  { %548 = vst [vmem:[#allocation5 + $0x18] sm:$0xff] %v532_v9  ;;  %v531_v12 = vmul.f32 0.4342945, %v502_v10  ;;  %729 = vlog2.f32 %v487_v11 }
 0x1c9   :  { %547 = vst [vmem:[#allocation5 + $0x10] sm:$0xff] %v531_v12 }
 0x1ca   :  { %v724_v13 = vpop.eup %723  ;;  %v680_v14 = vpop.f32.mrf.mxu1 }
 0x1cb   :  { %v508_v15 = vmul.f32 0.6931472, %v724_v13  ;;  %v490_v16 = vmax.f32 %v680_v14, 1e-10 }
 0x1cc   :  { %v726_v17 = vpop.eup %725  ;;  %v442_v18 = vpop.f32.mrf.mxu1 }
 0x1cd   :  { %v534_v19 = vmul.f32 0.4342945, %v508_v15  ;;  %v506_v20 = vmul.f32 0.6931472, %v726_v17  ;;  %731 = vlog2.f32 %v490_v16  ;;  %v489_v21 = vmax.f32 %v442_v18, 1e-10 }
 0x1cf   :  { %550 = vst [vmem:[#allocation5 + $0x28] sm:$0xff] %v534_v19  ;;  %v533_v22 = vmul.f32 0.4342945, %v506_v20  ;;  %733 = vlog2.f32 %v489_v21 }
 0x1d1   :  { %549 = vst [vmem:[#allocation5 + $0x20] sm:$0xff] %v533_v22 }
 0x1d2   :  { %v728_v23 = vpop.eup %727  ;;  %v683_v24 = vpop.f32.mrf.mxu1 }
 0x1d3   :  { %v512_v25 = vmul.f32 0.6931472, %v728_v23  ;;  %v492_v26 = vmax.f32 %v683_v24, 1e-10 }
 0x1d4   :  { %v730_v27 = vpop.eup %729  ;;  %v452_v28 = vpop.f32.mrf.mxu1 }
 0x1d5   :  { %v536_v29 = vmul.f32 0.4342945, %v512_v25  ;;  %v510_v30 = vmul.f32 0.6931472, %v730_v27  ;;  %735 = vlog2.f32 %v492_v26  ;;  %v491_v31 = vmax.f32 %v452_v28, 1e-10 }
 0x1d7   :  { %552 = vst [vmem:[#allocation5 + $0x38] sm:$0xff] %v536_v29  ;;  %v535_v32 = vmul.f32 0.4342945, %v510_v30  ;;  %737 = vlog2.f32 %v491_v31 }
 0x1d9   :  { %551 = vst [vmem:[#allocation5 + $0x30] sm:$0xff] %v535_v32 }
 0x1da   :  { %v732_v33 = vpop.eup %731  ;;  %v686_v34 = vpop.f32.mrf.mxu1 }
 0x1db   :  { %v516_v35 = vmul.f32 0.6931472, %v732_v33  ;;  %v494_v36 = vmax.f32 %v686_v34, 1e-10 }
 0x1dc   :  { %v734_v37 = vpop.eup %733  ;;  %v462_v38 = vpop.f32.mrf.mxu1 }
 0x1dd   :  { %v538_v39 = vmul.f32 0.4342945, %v516_v35  ;;  %v514_v40 = vmul.f32 0.6931472, %v734_v37  ;;  %739 = vlog2.f32 %v494_v36  ;;  %v493_v41 = vmax.f32 %v462_v38, 1e-10 }
 0x1df   :  { %554 = vst [vmem:[#allocation5 + $0x48] sm:$0xff] %v538_v39  ;;  %v537_v42 = vmul.f32 0.4342945, %v514_v40  ;;  %741 = vlog2.f32 %v493_v41 }
 0x1e1   :  { %553 = vst [vmem:[#allocation5 + $0x40] sm:$0xff] %v537_v42 }
 0x1e2   :  { %v736_v43 = vpop.eup %735  ;;  %v689_v44 = vpop.f32.mrf.mxu1 }
 0x1e3   :  { %v520_v45 = vmul.f32 0.6931472, %v736_v43  ;;  %v496_v46 = vmax.f32 %v689_v44, 1e-10 }
 0x1e4   :  { %v738_v47 = vpop.eup %737  ;;  %v472_v48 = vpop.f32.mrf.mxu1 }
 0x1e5   :  { %v540_v49 = vmul.f32 0.4342945, %v520_v45  ;;  %v518_v50 = vmul.f32 0.6931472, %v738_v47  ;;  %743 = vlog2.f32 %v496_v46  ;;  %v495_v51 = vmax.f32 %v472_v48, 1e-10 }
 0x1e7   :  { %556 = vst [vmem:[#allocation5 + $0x58] sm:$0xff] %v540_v49  ;;  %v539_v52 = vmul.f32 0.4342945, %v518_v50  ;;  %745 = vlog2.f32 %v495_v51 }
 0x1e9   :  { %555 = vst [vmem:[#allocation5 + $0x50] sm:$0xff] %v539_v52 }
 0x1ea   :  { %v740_v53 = vpop.eup %739 }
 0x1eb   :  { %v524_v54 = vmul.f32 0.6931472, %v740_v53 }
 0x1ec   :  { %v742_v55 = vpop.eup %741 }
 0x1ed   :  { %v542_v56 = vmul.f32 0.4342945, %v524_v54  ;;  %v522_v57 = vmul.f32 0.6931472, %v742_v55 }
 0x1ef   :  { %558 = vst [vmem:[#allocation5 + $0x68] sm:$0xff] %v542_v56  ;;  %v541_v58 = vmul.f32 0.4342945, %v522_v57 }
 0x1f1   :  { %557 = vst [vmem:[#allocation5 + $0x60] sm:$0xff] %v541_v58 }
 0x1f2   :  { %v744_v59 = vpop.eup %743 }
 0x1f3   :  { %v528_v60 = vmul.f32 0.6931472, %v744_v59 }
 0x1f4   :  { %v746_v61 = vpop.eup %745 }
 0x1f5   :  { %v544_v62 = vmul.f32 0.4342945, %v528_v60  ;;  %v526_v63 = vmul.f32 0.6931472, %v746_v61 }
 0x1f7   :  { %560 = vst [vmem:[#allocation5 + $0x78] sm:$0xff] %v544_v62  ;;  %v543_v0 = vmul.f32 0.4342945, %v526_v63 }
 0x1f9   :  { %559 = vst [vmem:[#allocation5 + $0x70] sm:$0xff] %v543_v0 }
 0x1fa   :  { %778 = shalt.err (!%p775_p9)
}
 0x1fb   :  { %572 = dma.vmem_to_hbm [thread:$0]  %s567_s24, 2048, %s895_s3, [#allocation4], %s792_s15, %s792_s15, %s793_s16  }
 0x1fc   :  { %789 = dma.done.wait [#allocation4], 2048  }
 0x1fd   :  { %790 = vsyncadd [#allocation4], 4294965248 }
 0x1fe   :  { %576 = vsyncpa [#allocation3], 1 }
 0x1ff   :  { %577 = vsyncpa [#allocation4], 1 }

</bundles_post_ra>
